<compile_context>
chip_gen: v6e
topology: v6e:2x2x1
jax: 0.10.0
libtpu: 0.0.40
codegen_flags: <defaults>
</compile_context>

<pallas_src>
import jax
import jax.numpy as jnp
from jax.experimental import pallas as pl
from jax.experimental.pallas import tpu as pltpu

LANE = 128
_SINGLE_BUFFER_WEIGHT_BYTES = 4 << 20  # single-buffer resident operands past this size


def _round_up(n, m):
    return ((n + m - 1) // m) * m


def mlp_kernel(x_ref, w1_ref, b1_ref, w2_ref, b2_ref, o_ref):
    # Layer 1 on the MXU: bf16 operands (x cast in-kernel), f32 accumulation.
    h = jnp.dot(x_ref[...].astype(w1_ref.dtype), w1_ref[...],
                preferred_element_type=jnp.float32)
    # Bias add + ReLU epilogue in f32 on the VPU.
    h = jnp.maximum(h + b1_ref[...], 0.0)
    # Layer 2 on the MXU.
    y = jnp.dot(h.astype(w2_ref.dtype), w2_ref[...],
                preferred_element_type=jnp.float32)
    # Narrow only at the store (o_ref is bf16) -> halves the output HBM stream.
    o_ref[...] = (y + b2_ref[...]).astype(o_ref.dtype)


def prepare_params(w1, b1, w2, b2, *, compute_dtype=jnp.bfloat16):
    """One-time (per model) parameter prep: pad lane dims to multiples of 128 and
    cast matmul operands to bf16. Biases stay f32 and are pre-shaped (1, N)."""
    in_size, hid = w1.shape
    _, out = w2.shape
    hid_p = _round_up(hid, LANE)
    out_p = _round_up(out, LANE)
    w1_p = jnp.pad(w1, ((0, 0), (0, hid_p - hid))).astype(compute_dtype)
    b1_p = jnp.pad(b1, (0, hid_p - hid)).reshape(1, hid_p).astype(jnp.float32)
    w2_p = jnp.pad(w2, ((0, hid_p - hid), (0, out_p - out))).astype(compute_dtype)
    b2_p = jnp.pad(b2, (0, out_p - out)).reshape(1, out_p).astype(jnp.float32)
    return w1_p, b1_p, w2_p, b2_p, out


def _choose_batch_tile(B, block_b):
    """Pick a row tile that (a) gives >= 2 grid steps whenever possible (keeps both
    v7x TensorCores busy), (b) never exceeds block_b, (c) minimizes tail padding."""
    n_tiles = max(2, pl.cdiv(B, block_b))
    tb = _round_up(pl.cdiv(B, n_tiles), 16)       # 16-row multiple: sublane packing
    return min(tb, _round_up(B, 16))


def _resident_spec(shape, nbytes):
    """Constant index_map -> DMA'd once, resident in VMEM across all grid steps.
    Large constants are single-buffered (double-buffering a constant wastes VMEM)."""
    if nbytes >= _SINGLE_BUFFER_WEIGHT_BYTES:
        return pl.BlockSpec(shape, lambda i: (0, 0), pipeline_mode=pl.Buffered(1))
    return pl.BlockSpec(shape, lambda i: (0, 0))


def mlp_rep_encoder2(x, w1_p, b1_p, w2_p, b2_p, out_size, *, block_b=2048):
    """Fused MLP forward over a batched grid.
    x: (B, in) f32 (fed raw; cast happens in-kernel). Returns (B, out) in x.dtype."""
    B, in_size = x.shape
    hid_p = w1_p.shape[1]
    out_p = w2_p.shape[1]
    store_dtype = w1_p.dtype                       # bf16 output store

    tb = _choose_batch_tile(B, block_b)
    grid = (pl.cdiv(B, tb),)                       # ragged last block handled by Pallas

    # VMEM budget: resident weights (+biases) plus double-buffered x / y tiles.
    w_bytes = [int(a.size) * a.dtype.itemsize for a in (w1_p, b1_p, w2_p, b2_p)]
    resident_bytes = sum(b if b >= _SINGLE_BUFFER_WEIGHT_BYTES else 2 * b
                         for b in w_bytes)
    x_tile_bytes = tb * in_size * x.dtype.itemsize
    y_tile_bytes = tb * out_p * jnp.dtype(store_dtype).itemsize
    vmem_need = resident_bytes + 2 * (x_tile_bytes + y_tile_bytes)
    vmem_limit = int(min(max(vmem_need + (8 << 20), 32 << 20), 64 << 20))

    work_rows = grid[0] * tb
    flops = 2 * work_rows * (in_size * hid_p + hid_p * out_p)
    bytes_accessed = (B * in_size * x.dtype.itemsize
                      + sum(w_bytes)
                      + B * out_p * jnp.dtype(store_dtype).itemsize)

    y = pl.pallas_call(
        mlp_kernel,
        out_shape=jax.ShapeDtypeStruct((B, out_p), store_dtype),
        grid=grid,
        in_specs=[
            pl.BlockSpec((tb, in_size), lambda i: (i, 0)),   # x: streamed per tile (f32)
            _resident_spec((in_size, hid_p), w_bytes[0]),    # W1: resident
            _resident_spec((1, hid_p), w_bytes[1]),          # b1: resident
            _resident_spec((hid_p, out_p), w_bytes[2]),      # W2: resident
            _resident_spec((1, out_p), w_bytes[3]),          # b2: resident
        ],
        out_specs=pl.BlockSpec((tb, out_p), lambda i: (i, 0)),   # y: streamed per tile
        compiler_params=pltpu.CompilerParams(
            dimension_semantics=("parallel",),               # 2-TC sharding on v7x
            vmem_limit_bytes=vmem_limit),
        cost_estimate=pl.CostEstimate(
            flops=flops, transcendentals=0, bytes_accessed=bytes_accessed),
    )(x, w1_p, b1_p, w2_p, b2_p)

    # Slice away lane padding (padded columns are exactly zero) and upcast to f32.
    return y[:, :out_size].astype(x.dtype)


def init_params(key, input_size, hidden_size, output_size, dtype=jnp.float32):
    """Deterministic init mimicking nn.Linear's U(-1/sqrt(fan_in), 1/sqrt(fan_in)).
    Weights stored pre-transposed: (in_features, out_features)."""
    k1, k2, k3, k4 = jax.random.split(key, 4)
    lim1 = 1.0 / jnp.sqrt(jnp.asarray(input_size, dtype))
    lim2 = 1.0 / jnp.sqrt(jnp.asarray(hidden_size, dtype))
    w1 = jax.random.uniform(k1, (input_size, hidden_size), dtype, -lim1, lim1)
    b1 = jax.random.uniform(k2, (hidden_size,), dtype, -lim1, lim1)
    w2 = jax.random.uniform(k3, (hidden_size, output_size), dtype, -lim2, lim2)
    b2 = jax.random.uniform(k4, (output_size,), dtype, -lim2, lim2)
    return w1, b1, w2, b2


if __name__ == "__main__":
    # Small shapes consistent with the module; batch=40 exercises a 2-step grid
    # with a ragged last block (tb=32 -> blocks of 32 and 8 rows).
    batch, input_size, hidden_size, output_size = 40, 32, 64, 16

    key = jax.random.PRNGKey(0)
    kx, kp = jax.random.split(key)
    x = jax.random.normal(kx, (batch, input_size), jnp.float32)
    w1, b1, w2, b2 = init_params(kp, input_size, hidden_size, output_size)

    # One-time parameter prep (pad + bf16 cast), then the fused kernel call.
    w1_p, b1_p, w2_p, b2_p, out_size = prepare_params(w1, b1, w2, b2)
    out = mlp_rep_encoder2(x, w1_p, b1_p, w2_p, b2_p, out_size)
    out = jax.block_until_ready(out)

    # Reference 1: same bf16-MXU math as the kernel path (tolerance absorbs the
    # final bf16 output rounding).
    xb = x.astype(jnp.bfloat16)
    h_ref = jnp.maximum(
        jnp.dot(xb, w1.astype(jnp.bfloat16), preferred_element_type=jnp.float32) + b1,
        0.0)
    ref_bf16 = jnp.dot(h_ref.astype(jnp.bfloat16), w2.astype(jnp.bfloat16),
                       preferred_element_type=jnp.float32) + b2

    # Reference 2: pure-f32 PyTorch-equivalent forward (loose tolerance: bf16 rounding).
    ref_f32 = jnp.maximum(x @ w1 + b1, 0.0) @ w2 + b2

    assert out.shape == (batch, output_size)
    assert out.dtype == jnp.float32
    assert jnp.allclose(out, ref_bf16, atol=2e-2, rtol=2e-2), "mismatch vs bf16 reference"
    assert jnp.allclose(out, ref_f32, atol=1e-1, rtol=1e-1), "mismatch vs f32 reference"

    print("KERNEL_OK")
</pallas_src>

<mosaic_0001>
module attributes {stable_mosaic.version = 11 : i64} {
  func.func @mlp_kernel(%arg0: i32, %arg1: memref<32x32xf32, #tpu.memory_space<vmem>>, %arg2: memref<32x128xbf16, #tpu.memory_space<vmem>>, %arg3: memref<1x128xf32, #tpu.memory_space<vmem>>, %arg4: memref<128x128xbf16, #tpu.memory_space<vmem>>, %arg5: memref<1x128xf32, #tpu.memory_space<vmem>>, %arg6: memref<32x128xbf16, #tpu.memory_space<vmem>>) attributes {dimension_semantics = [#tpu.dimension_semantics<parallel>], iteration_bounds = array<i64: 2>, scalar_prefetch = 0 : i64, scratch_operands = 0 : i64, tpu.core_type = #tpu.core_type<tc>, window_params = [{transform_indices = @transform_0, window_bounds = array<i64: 32, 32>}, {pipeline_mode = #tpu.pipeline_mode<synchronous>, transform_indices = @transform_1, window_bounds = array<i64: 32, 128>}, {pipeline_mode = #tpu.pipeline_mode<synchronous>, transform_indices = @transform_2, window_bounds = array<i64: 1, 128>}, {pipeline_mode = #tpu.pipeline_mode<synchronous>, transform_indices = @transform_3, window_bounds = array<i64: 128, 128>}, {pipeline_mode = #tpu.pipeline_mode<synchronous>, transform_indices = @transform_4, window_bounds = array<i64: 1, 128>}, {transform_indices = @transform_5, window_bounds = array<i64: 32, 128>}]} {
    %c0 = arith.constant 0 : index
    %c0_0 = arith.constant 0 : index
    %0 = vector.load %arg1[%c0, %c0_0] : memref<32x32xf32, #tpu.memory_space<vmem>>, vector<32x32xf32>
    %1 = arith.truncf %0 : vector<32x32xf32> to vector<32x32xbf16>
    %c0_1 = arith.constant 0 : index
    %c0_2 = arith.constant 0 : index
    %2 = vector.load %arg2[%c0_1, %c0_2] : memref<32x128xbf16, #tpu.memory_space<vmem>>, vector<32x128xbf16>
    %cst = arith.constant dense<0.000000e+00> : vector<32x128xf32>
    %3 = tpu.matmul %1, %2, %cst {dimension_numbers = #tpu.dot_dimension_numbers<[1], [0], [0], [1], [0, 0, 1, 1], [], []>} : vector<32x32xbf16>, vector<32x128xbf16>, vector<32x128xf32> -> vector<32x128xf32>
    %c0_3 = arith.constant 0 : index
    %c0_4 = arith.constant 0 : index
    %4 = vector.load %arg3[%c0_3, %c0_4] : memref<1x128xf32, #tpu.memory_space<vmem>>, vector<1x128xf32>
    %5 = vector.broadcast %4 : vector<1x128xf32> to vector<32x128xf32>
    %6 = arith.addf %3, %5 : vector<32x128xf32>
    %cst_5 = arith.constant 0.000000e+00 : f32
    %7 = vector.broadcast %cst_5 : f32 to vector<32x128xf32>
    %8 = arith.maximumf %6, %7 : vector<32x128xf32>
    %9 = arith.truncf %8 : vector<32x128xf32> to vector<32x128xbf16>
    %c0_6 = arith.constant 0 : index
    %c0_7 = arith.constant 0 : index
    %10 = vector.load %arg4[%c0_6, %c0_7] : memref<128x128xbf16, #tpu.memory_space<vmem>>, vector<128x128xbf16>
    %cst_8 = arith.constant dense<0.000000e+00> : vector<32x128xf32>
    %11 = tpu.matmul %9, %10, %cst_8 {dimension_numbers = #tpu.dot_dimension_numbers<[1], [0], [0], [1], [0, 0, 1, 1], [], []>} : vector<32x128xbf16>, vector<128x128xbf16>, vector<32x128xf32> -> vector<32x128xf32>
    %c0_9 = arith.constant 0 : index
    %c0_10 = arith.constant 0 : index
    %12 = vector.load %arg5[%c0_9, %c0_10] : memref<1x128xf32, #tpu.memory_space<vmem>>, vector<1x128xf32>
    %13 = vector.broadcast %12 : vector<1x128xf32> to vector<32x128xf32>
    %14 = arith.addf %11, %13 : vector<32x128xf32>
    %15 = arith.truncf %14 : vector<32x128xf32> to vector<32x128xbf16>
    %c0_11 = arith.constant 0 : index
    %c0_12 = arith.constant 0 : index
    %16 = vector.load %arg6[%c0_11, %c0_12] : memref<32x128xbf16, #tpu.memory_space<vmem>>, vector<32x128xbf16>
    tpu.vector_store %arg6[%c0_11, %c0_12], %15 {strides = array<i32>} : memref<32x128xbf16, #tpu.memory_space<vmem>>, vector<32x128xbf16>,
    return
  }
  func.func @transform_0(%arg0: i32) -> (i32, i32) {
    %c0_i32 = arith.constant 0 : i32
    %c0_i32_0 = arith.constant 0 : i32
    return %arg0, %c0_i32 : i32, i32
  }
  func.func @transform_1(%arg0: i32) -> (i32, i32) {
    %c0_i32 = arith.constant 0 : i32
    %c0_i32_0 = arith.constant 0 : i32
    %c0_i32_1 = arith.constant 0 : i32
    return %c0_i32, %c0_i32_0 : i32, i32
  }
  func.func @transform_2(%arg0: i32) -> (i32, i32) {
    %c0_i32 = arith.constant 0 : i32
    %c0_i32_0 = arith.constant 0 : i32
    %c0_i32_1 = arith.constant 0 : i32
    return %c0_i32, %c0_i32_0 : i32, i32
  }
  func.func @transform_3(%arg0: i32) -> (i32, i32) {
    %c0_i32 = arith.constant 0 : i32
    %c0_i32_0 = arith.constant 0 : i32
    %c0_i32_1 = arith.constant 0 : i32
    return %c0_i32, %c0_i32_0 : i32, i32
  }
  func.func @transform_4(%arg0: i32) -> (i32, i32) {
    %c0_i32 = arith.constant 0 : i32
    %c0_i32_0 = arith.constant 0 : i32
    %c0_i32_1 = arith.constant 0 : i32
    return %c0_i32, %c0_i32_0 : i32, i32
  }
  func.func @transform_5(%arg0: i32) -> (i32, i32) {
    %c0_i32 = arith.constant 0 : i32
    %c0_i32_0 = arith.constant 0 : i32
    return %arg0, %c0_i32 : i32, i32
  }
}

</mosaic_0001>

<bundles_post_ra>
// kernel: tpu_custom_call.1
= control target key start
LH: loop header
LB: loop body
LE: loop exit
PB: predicated region body
PF: predicated region fallthrough
CT: control target
= control target key end

     0   :  { %10 = vsyncpa [#allocation3], 0  ;;  %s1040_s0 = inlined_call_operand.vmem [shape: f32[40,32], index: 0, kind: input, shape index: {}]   ;;  %s1041_s1 = inlined_call_operand.hbm [shape: bf16[32,128], index: 1, kind: input, shape index: {}]   ;;  %s1042_s2 = inlined_call_operand.vmem [shape: f32[1,128], index: 2, kind: input, shape index: {}]   ;;  %s1043_s3 = inlined_call_operand.vmem [shape: bf16[128,128], index: 3, kind: input, shape index: {}]   ;;  %s1044_s4 = inlined_call_operand.vmem [shape: f32[1,128], index: 4, kind: input, shape index: {}]   ;;  %s1045_s5 = inlined_call_operand.hbm [shape: bf16[40,128], index: 5, kind: output, shape index: {}]  }
   0x1   :  { %11 = vsyncpa [#allocation4], 0 }
   0x2   :  { %13 = vsyncpa [#allocation4 + $0x1], 0  ;;  %s876_s18 = smov 0   ;;  %s878_s19 = smov 0  }
   0x3   :  { %s880_s20 = smov 0   ;;  %s882_s21 = smov 0  }
   0x4 LB: > { %s897_s22 = sadd.s32 4294967295, %s838_s21   ;;  %s591_s23 = sadd.s32 4294967294, %s838_s21   ;;  %s838_s21 = sphi %s882_s21, %s1053_s21   ;;  %s834_s20 = sphi %s880_s20, %s1052_s20   ;;  %s830_s19 = sphi %s878_s19, %s1051_s19   ;;  %s826_s18 = sphi %s876_s18, %s1050_s18  }
   0x5   : > { %s901_s24 = sadd.s32 1, %s838_s21   ;;  %s136_s25 = sadd.s32 1, %s834_s20 }
   0x6   : > { %s133_s26 = ssub.s32 %s838_s21, %s901_s24  ;;  %p146_p0 = scmp.ne.s32.totalorder %s834_s20, %s830_s19 }
   0x7   : > { %p134_p1 = scmp.eq.s32.totalorder %s133_s26, 0  ;;  %p147_p2 = scmp.eq.s32.totalorder %s897_s22, 1 }
   0x8   : > { %p152_p3 = scmp.ne.s32.totalorder %s830_s19, %s826_s18  ;;  %p153_p4 = scmp.eq.s32.totalorder %s591_s23, 1 }
   0x9   : > { %s912_s27 = scalar_select %p134_p1, %s834_s20, %s136_s25  }
   0xa   : > { %p914_p5 = por %p147_p2, %p146_p0  ;;  %p918_p6 = por %p153_p4, %p152_p3 }
   0xb   : > { %p592_p7 = scmp.ge.s32.totalorder %s838_s21, 1  ;;  %p160_p8 = scmp.lt.s32.totalorder %s838_s21, 3 }
   0xc   : > { %s1047_s29 = scalar_select %p918_p6, 1, 0 }
   0xd   : > { %p698_p9 = scmp.eq.s32.totalorder %s897_s22, 0  ;;  %p925_p10 = pnand %p592_p7, %p160_p8 }
   0xe   : > { %s840_s6 = smov [#allocation2]  }
   0xf   : > { %s172_s7 = sshll.u32 %s840_s6, 4  ;;  %p690_p11 = pneg %p925_p10  ;;  %s173_s7 = int_to_ptr.vmem [resolvable:$true] %s172_s7 }
  0x10   : > { %s759_s8 = scalar_lea.vmem %s173_s7, 256  ;;  %p767_p3 = scmp.lt.s32.totalorder %s173_s7, %s173_s7 }
  0x11   : > { %p691_p12 = pnand %p698_p9, %p690_p11  ;;  %p760_p0 = scmp.ne.s32.totalorder %s173_s7, %s759_s8 }
  0x12   : > { %p768_p4 = scmp.lt.s32.totalorder %s759_s8, %s759_s8 }
  0x13   : > { %p750_p13 = pneg %p691_p12 }
  0x14   : > { %p769_p6 = por %p768_p4, %p767_p3 }
  0x15   : > { %p762_p1 = pnand %p760_p0, %p750_p13 }
  0x17   : > { %p763_p2 = pneg %p762_p1 }
  0x19   : > { %p770_p7 = pnand %p769_p6, %p763_p2 }
  0x1b   : > { %773 = shalt.err (!%p770_p7)
}
  0x1c   : > { %s841_s9 = smov 64   ;;  %s842_s10 = smov 4  }
  0x1d   : > { %693 = dma.hbm_to_vmem [thread:$0]  (!%p691_p12), %s1041_s1, 256, %s173_s7, [#allocation3], %s841_s9, %s841_s9, %s842_s10  }
  0x1e   : > { %214 = sbr.rel (%p925_p10) target bundleno = 484 (0x1e4), region = 40 }
  0x23   : > { %817 = dma.done.wait (%p698_p9), [#allocation3], 256  }
  0x24   : > { %819 = vsyncadd (%p698_p9), [#allocation3], 4294967040  ;;  %s943_s13 = sshll.u32 %s897_s22, 2  ;;  %v738_v0 = vld [vmem:[#allocation2 + $0x8] sm:$0xff]   ;;  %v739_v1 = vld [vmem:[#allocation2] sm:$0xff]   ;;  %vm295_vm0 = vcmask 261120  }
  0x25   : > { %p251_p6 = scmp.lt.s32.totalorder %s943_s13, 4  ;;  %657 = vmatprep.subr.bf16.mxu0 %v738_v0  ;;  %v740_v7 = vld [vmem:[%s1043_s3 + $0x38] sm:$0xff]   ;;  %v741_v8 = vld [vmem:[%s1043_s3 + $0x30] sm:$0xff]   ;;  %v742_v10 = vld [vmem:[%s1043_s3 + $0x28] sm:$0xff]   ;;  %s243_s6 = sand.u32 1, %s830_s19  }
  0x26   : > { %658 = vmatpush3.bf16.msra.mxu0 %v738_v0  ;;  %665 = vmatprep.subr.bf16.mxu1 %v740_v7  ;;  %v743_v11 = vld [vmem:[%s1043_s3 + $0x20] sm:$0xff]   ;;  %v744_v12 = vld [vmem:[%s1043_s3 + $0x18] sm:$0xff]   ;;  %v745_v13 = vld [vmem:[%s1043_s3 + $0x10] sm:$0xff]   ;;  %s597_s9 = sshll.u32 %s243_s6, 4  ;;  %s981_s11 = scalar_lea.sflag [#allocation4], %s243_s6 }
  0x27   : > { %s252_s14 = scalar_select %p251_p6, %s943_s13, 4  ;;  %659 = vmatprep.subr.bf16.mxu0 %v739_v1  ;;  %666 = vmatpush3.bf16.msra.mxu1 %v740_v7  ;;  %v746_v14 = vld [vmem:[%s1043_s3 + $0x8] sm:$0xff]   ;;  %v747_v15 = vld [vmem:[%s1043_s3] sm:$0xff]  }
  0x28   : > { %667 = vmatprep.subr.bf16.mxu1 %v741_v8  ;;  %v600_v18 = vld [vmem:[%s1042_s2] ss:$0 sm:$0xff]  ;;  %s245_s10 = scalar_lea.vmem [#allocation5], %s597_s9  ;;  %s506_s12 = ssub.s32 (%p914_p5), 5, %s943_s13 }
  0x29   : > { %s599_s15 = sshll.u32 %s252_s14, 3  ;;  %v605_v32 = vld [vmem:[%s1044_s4] ss:$0 sm:$0xff]  ;;  %p507_p8 = scmp.lt.s32.totalorder (%p914_p5), %s506_s12, 4 }
  0x2a   : > { %s254_s23 = scalar_lea.vmem %s1040_s0, %s599_s15  ;;  %660 = vmatpush3.bf16.msra.mxu0 %v739_v1 }
  0x2b   : > { %v266_v2 = vld [vmem:[%s254_s23] sm:$0xff]  ;;  %v267_v3 = vld [vmem:[%s254_s23 + $0x8] sm:$0xff]  ;;  %v268_v4 = vld [vmem:[%s254_s23 + $0x10] sm:$0xff]  ;;  %668 = vmatpush3.bf16.msra.mxu1 %v741_v8 }
  0x2c   : > { %v270_v5 = vpack.c.bf16 %v267_v3, %v266_v2  ;;  %v269_v6 = vld [vmem:[%s254_s23 + $0x18] sm:$0xff]  ;;  %669 = vmatprep.subr.bf16.mxu1 %v742_v10 }
  0x2d   : > { %v271_v9 = vpack.c.bf16 %v269_v6, %v268_v4 }
  0x2e   : > { %661 = vmatprep.mubr.msk.bf16.mxu0 %vm295_vm0, %v270_v5 }
  0x2f   : > { %662 = vmatmul.mubr.msk.bf16.vlgmr.msra.gmra.mxu0 %vm295_vm0, %v271_v9  ;;  %670 = vmatpush3.bf16.msra.mxu1 %v742_v10 }
  0x30   : > { %671 = vmatprep.subr.bf16.mxu1 %v743_v11 }
  0x33   : > { %672 = vmatpush3.bf16.msra.mxu1 %v743_v11 }
  0x34   : > { %673 = vmatprep.subr.bf16.mxu1 %v744_v12 }
  0x37   : > { %674 = vmatpush3.bf16.msra.mxu1 %v744_v12 }
  0x38   : > { %675 = vmatprep.subr.bf16.mxu1 %v745_v13 }
  0x3b   : > { %676 = vmatpush3.bf16.msra.mxu1 %v745_v13 }
  0x3c   : > { %677 = vmatprep.subr.bf16.mxu1 %v746_v14 }
  0x3f   : > { %678 = vmatpush3.bf16.msra.mxu1 %v746_v14 }
  0x40   : > { %679 = vmatprep.subr.bf16.mxu1 %v747_v15 }
  0x43   : > { %680 = vmatpush3.bf16.msra.mxu1 %v747_v15 }
  0xef   : > { %v663_v16 = vpop.f32.mrf.mxu0 }
  0xf0   : > { %v345_v22 = vadd.f32 %v663_v16, %v600_v18 }
  0xf1   : > { %v336_v17 = vpop.f32.mrf.mxu0 }
  0xf2   : > { %v337_v20 = vadd.f32 %v600_v18, %v336_v17  ;;  %v353_v28 = vmax.f32 %v345_v22, 0.0 }
  0xf3   : > { %v664_v19 = vpop.f32.mrf.mxu0 }
  0xf4   : > { %v348_v21 = vadd.f32 %v664_v19, %v600_v18  ;;  %v351_v26 = vmax.f32 %v337_v20, 0.0 }
  0xf5   : > { %v339_v23 = vpop.f32.mrf.mxu0 }
  0xf6   : > { %v340_v24 = vadd.f32 %v600_v18, %v339_v23  ;;  %v354_v25 = vmax.f32 %v348_v21, 0.0 }
  0xf8   : > { %v352_v27 = vmax.f32 %v340_v24, 0.0  ;;  %v356_v30 = vpack.c.bf16 %v354_v25, %v353_v28 }
  0xfa   : > { %v355_v29 = vpack.c.bf16 %v352_v27, %v351_v26 }
  0xfc   : > { %681 = vmatprep.mubr.bf16.mxu1 %v355_v29 }
  0xfd   : > { %682 = vmatmul.mubr.bf16.vlgmr.msra.gmra.mxu1 %v356_v30 }
 0x1bd   : > { %v683_v31 = vpop.f32.mrf.mxu1 }
 0x1be   : > { %v471_v35 = vadd.f32 %v683_v31, %v605_v32 }
 0x1bf   : > { %v462_v33 = vpop.f32.mrf.mxu1 }
 0x1c0   : > { %v463_v38 = vadd.f32 %v605_v32, %v462_v33 }
 0x1c1   : > { %v684_v34 = vpop.f32.mrf.mxu1 }
 0x1c2   : > { %v474_v36 = vadd.f32 %v684_v34, %v605_v32 }
 0x1c3   : > { %v465_v37 = vpop.f32.mrf.mxu1 }
 0x1c4   : > { %v640_v39 = vpack.c.bf16 %v474_v36, %v471_v35  ;;  %v466_v40 = vadd.f32 %v605_v32, %v465_v37  ;;  %504 = sbr.rel (!%p914_p5) target bundleno = 484 (0x1e4), region = 48 }
 0x1c6   : > { %642 = vst [vmem:[%s245_s10 + $0x8] sm:$0xff] %v640_v39   ;;  %v635_v41 = vpack.c.bf16 %v466_v40, %v463_v38 }
 0x1c8   : > { %636 = vst [vmem:[%s245_s10] sm:$0xff] %v635_v41  }
 0x1c9   : > { %s1055_s12 = smov (!%p507_p8, %s506_s12), 4 }
 0x1ca   : > { %s986_s14 = sshll.u32 %s1055_s12, 6 }
 0x1cb   : > { %s511_s15 = ssub.s32 256, %s986_s14 }
 0x1cc   : > { %512 = vsyncadd %s981_s11, %s511_s15  ;;  %p621_p9 = scmp.ne.s32.totalorder %s986_s14, 0  ;;  %s631_s16 = sshll.u32 %s897_s22, 8 }
 0x1cd   : > { %s995_s28 = scalar_lea.hbm %s1045_s5, %s631_s16  ;;  %s517_s25 = sshll.u32 %s245_s10, 4  ;;  %s997_s25 = int_to_ptr.vmem [resolvable:$true] %s517_s25 }
 0x1ce   : > { %s774_s13 = scalar_lea.vmem %s997_s25, %s986_s14  ;;  %s843_s26 = smov [#allocation5]  }
 0x1cf   : > { %p775_p5 = scmp.ne.s32.totalorder %s997_s25, %s774_s13  ;;  %s778_s30 = sshll.u32 %s843_s26, 4  ;;  %s779_s30 = int_to_ptr.vmem [resolvable:$false] %s778_s30 }
 0x1d0   : > { %s780_s22 = scalar_lea.vmem %s779_s30, 512  ;;  %p781_p12 = scmp.lt.s32.totalorder %s997_s25, %s779_s30 }
 0x1d1   : > { %p776_p10 = pnand %p775_p5, %p621_p9  ;;  %p782_p13 = scmp.lt.s32.totalorder %s780_s22, %s774_s13 }
 0x1d3   : > { %p777_p11 = pneg %p776_p10  ;;  %p783_p0 = por %p782_p13, %p781_p12 }
 0x1d5   : > { %p784_p1 = pnand %p783_p0, %p777_p11 }
 0x1d7   : > { %787 = shalt.err (!%p784_p1)
}
 0x1d8   : > { %s788_s6 = scalar_lea.hbm %s995_s28, %s986_s14  ;;  %s792_s9 = scalar_lea.hbm %s1045_s5, 320 }
 0x1d9   : > { %p789_p2 = scmp.ne.s32.totalorder %s995_s28, %s788_s6  ;;  %p793_p7 = scmp.lt.s32.totalorder %s995_s28, %s1045_s5 }
 0x1da   : > { %p794_p6 = scmp.lt.s32.totalorder %s792_s9, %s788_s6 }
 0x1db   : > { %p790_p3 = pnand %p789_p2, %p621_p9 }
 0x1dc   : > { %p795_p8 = por %p794_p6, %p793_p7 }
 0x1dd   : > { %p791_p4 = pneg %p790_p3 }
 0x1df   : > { %p796_p5 = pnand %p795_p8, %p791_p4 }
 0x1e1   : > { %799 = shalt.err (!%p796_p5)
}
 0x1e2   : > { %s844_s15 = smov 64   ;;  %s845_s16 = smov 4  }
 0x1e3   : > { %523 = dma.vmem_to_hbm [thread:$0]  (%p621_p9), %s997_s25, %s986_s14, %s995_s28, %s981_s11, %s844_s15, %s844_s15, %s845_s16  }
 0x1e4 PF: > { %p700_p10 = scmp.ge.s32.totalorder %s838_s21, 2  ;;  %s532_s17 = sand.u32 1, %s826_s18  }
 0x1e5   : > { %p1049_p11 = scmp.ne.s32.totalorder %s1047_s29, 0  ;;  %s533_s23 = scalar_lea.sflag [#allocation4], %s532_s17 }
 0x1e7   : > { %p695_p12 = pnand %p700_p10, %p1049_p11 }
 0x1e9   : > { %p696_p13 = pneg %p695_p12 }
 0x1eb   : > { %821 = dma.done.wait (%p696_p13), %s533_s23, 256  }
 0x1ec   : > { %823 = vsyncadd (%p696_p13), %s533_s23, 4294967040  ;;  %p16_p0 = scmp.ge.s32.totalorder %s901_s24, 4   ;;  %s1050_s18 = smov %s830_s19 }
 0x1ed   : > { %s1051_s19 = smov %s834_s20  ;;  %s1052_s20 = smov %s912_s27 }
 0x1ee   : > { %s1053_s21 = smov %s901_s24  ;;  %18 = sbr.rel (!%p16_p0) target bundleno = 4 (0x4), region = 80 }
 0x1f3   :  { %538 = vsyncpa [#allocation3], 1 }
 0x1f4   :  { %540 = vsyncpa [#allocation3 + $0x1], 1 }
 0x1f5   :  { %541 = vsyncpa [#allocation4], 1 }
 0x1f6   :  { %543 = vsyncpa [#allocation4 + $0x1], 1 }

</bundles_post_ra>
